<compile_context>
chip_gen: v6e
topology: v6e:2x2x1
jax: 0.10.0
libtpu: 0.0.40
codegen_flags: <defaults>
</compile_context>

<pallas_src>
import functools

import jax
import jax.numpy as jnp
from jax.experimental import pallas as pl
from jax.experimental.pallas import tpu as pltpu


def _ffn_kernel(x_ref, w1_ref, b1_ref, w2_ref, b2_ref, o_ref):
    # x_ref : (TILE_ROWS, D)   tile of the flattened (B*S, D) input
    # w1_ref: (D, H)  b1_ref: (1, H)  f32   (resident across all grid steps)
    # w2_ref: (H, D)  b2_ref: (1, D)  f32
    x = x_ref[...]

    # Linear(dim -> hidden) + bias + ReLU, all in VMEM / MXU / VPU.
    h = jnp.dot(x, w1_ref[...], preferred_element_type=jnp.float32)
    h = jnp.maximum(h + b1_ref[...], 0.0)

    # Linear(hidden -> dim) + bias.  Cast the activation back to the weight
    # dtype so a bf16 model keeps the fast bf16 MXU path (no-op for f32).
    y = jnp.dot(h.astype(w2_ref.dtype), w2_ref[...],
                preferred_element_type=jnp.float32)
    y = y + b2_ref[...]

    o_ref[...] = y.astype(o_ref.dtype)


def _round_up(n, m):
    return ((n + m - 1) // m) * m


def _choose_tile_rows(n_rows, dim, hidden, itemsize, requested,
                      budget_bytes=40 * 2**20):
    """Pick a row tile: big (amortize per-step overhead) but VMEM-safe on v7x."""
    # Weights + biases are resident (single copy, plus f32 biases).
    weight_bytes = (dim * hidden + hidden * dim) * itemsize + (hidden + dim) * 4
    # Per row: x tile + out tile (double-buffered) + f32 hidden + f32 out acc.
    per_row_bytes = 2 * 2 * dim * itemsize + (hidden + dim) * 4
    max_rows = max(8, (budget_bytes - weight_bytes) // max(per_row_bytes, 1))
    tr = min(int(requested), int(max_rows))
    tr = max(8, (tr // 8) * 8)                 # multiple of 8 sublanes
    tr = min(tr, _round_up(n_rows, 8))         # never bigger than (padded) input
    return tr


@functools.partial(jax.jit, static_argnames=("tile_rows",))
def feed_forward_pallas(x, w1, b1, w2, b2, *, tile_rows=512):
    """FeedForward.forward: relu(x @ W1 + b1) @ W2 + b2, fused in one Pallas kernel.

    x : [..., D]   w1 : [D, H]   b1 : [H]   w2 : [H, D]   b2 : [D]
    """
    orig_shape = x.shape
    D = orig_shape[-1]
    H = w1.shape[1]

    xf = x.reshape(-1, D)
    N = xf.shape[0]

    # Keep everything in the activation dtype for the MXU (bf16 stays bf16);
    # biases are pre-cast to f32 once so they add directly onto the f32 acc.
    w1c = w1.astype(x.dtype)
    w2c = w2.astype(x.dtype)
    b1f = b1.astype(jnp.float32).reshape(1, H)
    b2f = b2.astype(jnp.float32).reshape(1, D)

    itemsize = jnp.dtype(x.dtype).itemsize
    tr = _choose_tile_rows(N, D, H, itemsize, tile_rows)
    N_pad = _round_up(N, tr)
    if N_pad != N:
        xf = jnp.pad(xf, ((0, N_pad - N), (0, 0)))

    vmem_limit = min(
        56 * 1024 * 1024,
        int(1.5 * ((D * H + H * D) * itemsize + (H + D) * 4
                   + 4 * tr * D * itemsize + tr * (H + D) * 4))
        + (4 << 20),
    )

    out = pl.pallas_call(
        _ffn_kernel,
        out_shape=jax.ShapeDtypeStruct((N_pad, D), x.dtype),
        grid_spec=pltpu.PrefetchScalarGridSpec(
            num_scalar_prefetch=0,
            grid=(N_pad // tr,),
            in_specs=[
                pl.BlockSpec((tr, D), lambda i: (i, 0)),   # x row tile
                pl.BlockSpec((D, H), lambda i: (0, 0)),    # W1 (resident)
                pl.BlockSpec((1, H), lambda i: (0, 0)),    # b1 (resident)
                pl.BlockSpec((H, D), lambda i: (0, 0)),    # W2 (resident)
                pl.BlockSpec((1, D), lambda i: (0, 0)),    # b2 (resident)
            ],
            out_specs=pl.BlockSpec((tr, D), lambda i: (i, 0)),
        ),
        compiler_params=pltpu.CompilerParams(
            dimension_semantics=("parallel",),   # row tiles are independent
            vmem_limit_bytes=vmem_limit,         # > default scoped limit,
        ),                                       # < v7x 64 MiB physical
    )(xf, w1c, b1f, w2c, b2f)

    if N_pad != N:
        out = out[:N]
    return out.reshape(orig_shape)


if __name__ == "__main__":
    key = jax.random.PRNGKey(0)
    kx, kw1, kb1, kw2, kb2 = jax.random.split(key, 5)

    # Small shapes consistent with the module: tokens of width dim=32,
    # hidden_dim=64, over batch=2, seq=8.
    B, S, D, Hdim = 2, 8, 32, 64
    x = jax.random.normal(kx, (B, S, D), dtype=jnp.float32)

    # Deterministic, non-trivial FFN parameters.
    w1 = 0.05 * jax.random.normal(kw1, (D, Hdim), dtype=jnp.float32)
    b1 = 0.05 * jax.random.normal(kb1, (Hdim,), dtype=jnp.float32)
    w2 = 0.05 * jax.random.normal(kw2, (Hdim, D), dtype=jnp.float32)
    b2 = 0.05 * jax.random.normal(kb2, (D,), dtype=jnp.float32)

    out = feed_forward_pallas(x, w1, b1, w2, b2)
    out = jax.block_until_ready(out)

    # Pure-JAX reference (dropout p=0.0 -> identity).
    h_ref = jnp.maximum(x @ w1 + b1, 0.0)
    ref = h_ref @ w2 + b2

    assert out.shape == ref.shape, "shape mismatch vs reference"
    assert jnp.allclose(out, ref, atol=2e-3, rtol=2e-3), "mismatch vs reference"

    print("KERNEL_OK")
</pallas_src>

<mosaic_0001>
module attributes {stable_mosaic.version = 11 : i64} {
  func.func @_ffn_kernel(%arg0: i32, %arg1: memref<16x32xf32, #tpu.memory_space<vmem>>, %arg2: memref<32x64xf32, #tpu.memory_space<vmem>>, %arg3: memref<1x64xf32, #tpu.memory_space<vmem>>, %arg4: memref<64x32xf32, #tpu.memory_space<vmem>>, %arg5: memref<1x32xf32, #tpu.memory_space<vmem>>, %arg6: memref<16x32xf32, #tpu.memory_space<vmem>>) attributes {dimension_semantics = [#tpu.dimension_semantics<parallel>], iteration_bounds = array<i64: 1>, scalar_prefetch = 0 : i64, scratch_operands = 0 : i64, tpu.core_type = #tpu.core_type<tc>, window_params = [{transform_indices = @transform_0, window_bounds = array<i64: 16, 32>}, {pipeline_mode = #tpu.pipeline_mode<synchronous>, transform_indices = @transform_1, window_bounds = array<i64: 32, 64>}, {pipeline_mode = #tpu.pipeline_mode<synchronous>, transform_indices = @transform_2, window_bounds = array<i64: 1, 64>}, {pipeline_mode = #tpu.pipeline_mode<synchronous>, transform_indices = @transform_3, window_bounds = array<i64: 64, 32>}, {pipeline_mode = #tpu.pipeline_mode<synchronous>, transform_indices = @transform_4, window_bounds = array<i64: 1, 32>}, {transform_indices = @transform_5, window_bounds = array<i64: 16, 32>}]} {
    %c0 = arith.constant 0 : index
    %c0_0 = arith.constant 0 : index
    %0 = vector.load %arg1[%c0, %c0_0] : memref<16x32xf32, #tpu.memory_space<vmem>>, vector<16x32xf32>
    %c0_1 = arith.constant 0 : index
    %c0_2 = arith.constant 0 : index
    %1 = vector.load %arg2[%c0_1, %c0_2] : memref<32x64xf32, #tpu.memory_space<vmem>>, vector<32x64xf32>
    %cst = arith.constant dense<0.000000e+00> : vector<16x64xf32>
    %2 = tpu.matmul %0, %1, %cst {dimension_numbers = #tpu.dot_dimension_numbers<[1], [0], [0], [1], [0, 0, 1, 1], [], []>} : vector<16x32xf32>, vector<32x64xf32>, vector<16x64xf32> -> vector<16x64xf32>
    %c0_3 = arith.constant 0 : index
    %c0_4 = arith.constant 0 : index
    %3 = vector.load %arg3[%c0_3, %c0_4] : memref<1x64xf32, #tpu.memory_space<vmem>>, vector<1x64xf32>
    %4 = vector.broadcast %3 : vector<1x64xf32> to vector<16x64xf32>
    %5 = arith.addf %2, %4 : vector<16x64xf32>
    %cst_5 = arith.constant 0.000000e+00 : f32
    %6 = vector.broadcast %cst_5 : f32 to vector<16x64xf32>
    %7 = arith.maximumf %5, %6 : vector<16x64xf32>
    %c0_6 = arith.constant 0 : index
    %c0_7 = arith.constant 0 : index
    %8 = vector.load %arg4[%c0_6, %c0_7] : memref<64x32xf32, #tpu.memory_space<vmem>>, vector<64x32xf32>
    %cst_8 = arith.constant dense<0.000000e+00> : vector<16x32xf32>
    %9 = tpu.matmul %7, %8, %cst_8 {dimension_numbers = #tpu.dot_dimension_numbers<[1], [0], [0], [1], [0, 0, 1, 1], [], []>} : vector<16x64xf32>, vector<64x32xf32>, vector<16x32xf32> -> vector<16x32xf32>
    %c0_9 = arith.constant 0 : index
    %c0_10 = arith.constant 0 : index
    %10 = vector.load %arg5[%c0_9, %c0_10] : memref<1x32xf32, #tpu.memory_space<vmem>>, vector<1x32xf32>
    %11 = vector.broadcast %10 : vector<1x32xf32> to vector<16x32xf32>
    %12 = arith.addf %9, %11 : vector<16x32xf32>
    %c0_11 = arith.constant 0 : index
    %c0_12 = arith.constant 0 : index
    %13 = vector.load %arg6[%c0_11, %c0_12] : memref<16x32xf32, #tpu.memory_space<vmem>>, vector<16x32xf32>
    tpu.vector_store %arg6[%c0_11, %c0_12], %12 {strides = array<i32>} : memref<16x32xf32, #tpu.memory_space<vmem>>, vector<16x32xf32>,
    return
  }
  func.func @transform_0(%arg0: i32) -> (i32, i32) {
    %c0_i32 = arith.constant 0 : i32
    %c0_i32_0 = arith.constant 0 : i32
    return %arg0, %c0_i32 : i32, i32
  }
  func.func @transform_1(%arg0: i32) -> (i32, i32) {
    %c0_i32 = arith.constant 0 : i32
    %c0_i32_0 = arith.constant 0 : i32
    %c0_i32_1 = arith.constant 0 : i32
    return %c0_i32, %c0_i32_0 : i32, i32
  }
  func.func @transform_2(%arg0: i32) -> (i32, i32) {
    %c0_i32 = arith.constant 0 : i32
    %c0_i32_0 = arith.constant 0 : i32
    %c0_i32_1 = arith.constant 0 : i32
    return %c0_i32, %c0_i32_0 : i32, i32
  }
  func.func @transform_3(%arg0: i32) -> (i32, i32) {
    %c0_i32 = arith.constant 0 : i32
    %c0_i32_0 = arith.constant 0 : i32
    %c0_i32_1 = arith.constant 0 : i32
    return %c0_i32, %c0_i32_0 : i32, i32
  }
  func.func @transform_4(%arg0: i32) -> (i32, i32) {
    %c0_i32 = arith.constant 0 : i32
    %c0_i32_0 = arith.constant 0 : i32
    %c0_i32_1 = arith.constant 0 : i32
    return %c0_i32, %c0_i32_0 : i32, i32
  }
  func.func @transform_5(%arg0: i32) -> (i32, i32) {
    %c0_i32 = arith.constant 0 : i32
    %c0_i32_0 = arith.constant 0 : i32
    return %arg0, %c0_i32 : i32, i32
  }
}

</mosaic_0001>

<bundles_post_ra>
// kernel: feed_forward_pallas.1
= control target key start
LH: loop header
LB: loop body
LE: loop exit
PB: predicated region body
PF: predicated region fallthrough
CT: control target
= control target key end

     0   :  { %vm34_vm0 = vcmask 261120   ;;  %s398_s0 = inlined_call_operand.vmem [shape: f32[16,32], index: 0, kind: input, shape index: {}]   ;;  %s399_s1 = inlined_call_operand.vmem [shape: f32[32,64], index: 1, kind: input, shape index: {}]   ;;  %s400_s2 = inlined_call_operand.vmem [shape: f32[1,64], index: 2, kind: input, shape index: {}]   ;;  %s401_s3 = inlined_call_operand.vmem [shape: f32[64,32], index: 3, kind: input, shape index: {}]   ;;  %s402_s4 = inlined_call_operand.vmem [shape: f32[1,32], index: 4, kind: input, shape index: {}]   ;;  %s403_s5 = inlined_call_operand.hbm [shape: f32[16,32], index: 5, kind: output, shape index: {}]  }
   0x1   :  { %v26_v0 = vld [vmem:[%s399_s1 + $0x18] sm:$0xff]  ;;  %v25_v1 = vld [vmem:[%s399_s1 + $0x10] sm:$0xff]  ;;  %v21_v2 = vld [vmem:[%s398_s0] sm:$0xff] }
   0x2   :  { %255 = vmatprep.subr.mxu0 %v26_v0  ;;  %v24_v3 = vld [vmem:[%s399_s1 + $0x8] sm:$0xff]  ;;  %263 = vmatprep.mubr.msk.f32.mxu0 %vm34_vm0, %v21_v2  ;;  %v125_v4 = vld [vmem:[%s401_s3 + $0x38] sm:$0xff]  ;;  %v124_v5 = vld [vmem:[%s401_s3 + $0x30] sm:$0xff] }
   0x3   :  { %256 = vmatpush3.msra.mxu0 %v26_v0  ;;  %266 = vmatprep.subr.mxu1 %v125_v4 }
   0x4   :  { %257 = vmatprep.subr.mxu0 %v25_v1 }
   0x5   :  { %10 = vsyncpa [#allocation3], 0  ;;  %258 = vmatpush3.msra.mxu0 %v25_v1  ;;  %v23_v6 = vld [vmem:[%s399_s1] sm:$0xff]  ;;  %267 = vmatpush3.msra.mxu1 %v125_v4  ;;  %v123_v7 = vld [vmem:[%s401_s3 + $0x28] sm:$0xff]  ;;  %vm133_vm1 = vcmask 523264  }
   0x6   :  { %259 = vmatprep.subr.mxu0 %v24_v3  ;;  %268 = vmatprep.subr.mxu1 %v124_v5  ;;  %v22_v8 = vld [vmem:[%s398_s0 + $0x8] sm:$0xff]  ;;  %v122_v9 = vld [vmem:[%s401_s3 + $0x20] sm:$0xff]  ;;  %v121_v10 = vld [vmem:[%s401_s3 + $0x18] sm:$0xff] }
   0x7   :  { %260 = vmatpush3.msra.mxu0 %v24_v3  ;;  %269 = vmatpush3.msra.mxu1 %v124_v5  ;;  %v120_v11 = vld [vmem:[%s401_s3 + $0x10] sm:$0xff]  ;;  %v119_v12 = vld [vmem:[%s401_s3 + $0x8] sm:$0xff]  ;;  %v118_v13 = vld [vmem:[%s401_s3] sm:$0xff]  ;;  %s310_s3 = smov [#allocation2]  }
   0x8   :  { %261 = vmatprep.subr.mxu0 %v23_v6  ;;  %270 = vmatprep.subr.mxu1 %v123_v7  ;;  %v233_v14 = vld [vmem:[%s400_s2] ss:$0 sm:$0xff]  ;;  %s222_s23 = sshll.u32 %s310_s3, 4  ;;  %s223_s23 = int_to_ptr.vmem [resolvable:$true] %s222_s23 }
   0x9   :  { %262 = vmatpush3.msra.mxu0 %v23_v6  ;;  %271 = vmatpush3.msra.mxu1 %v123_v7  ;;  %v236_v21 = vld [vmem:[%s402_s4] ss:$0 sm:$0xff]  ;;  %s288_s2 = scalar_lea.vmem %s223_s23, 256  ;;  %p293_p1 = scmp.lt.s32.totalorder %s223_s23, %s223_s23 }
   0xa   :  { %264 = vmatmul.mubr.msk.f32.vlgmr.msra.gmra.mxu0 %vm34_vm0, %v22_v8  ;;  %272 = vmatprep.subr.mxu1 %v122_v9  ;;  %p289_p0 = scmp.ne.s32.totalorder %s223_s23, %s288_s2  ;;  %p294_p2 = scmp.lt.s32.totalorder %s288_s2, %s288_s2 }
   0xb   :  { %273 = vmatpush3.msra.mxu1 %v122_v9 }
   0xc   :  { %274 = vmatprep.subr.mxu1 %v121_v10  ;;  %p295_p3 = por %p294_p2, %p293_p1 }
   0xd   :  { %275 = vmatpush3.msra.mxu1 %v121_v10 }
   0xe   :  { %276 = vmatprep.subr.mxu1 %v120_v11  ;;  %p296_p4 = pnand %p295_p3, %p289_p0 }
   0xf   :  { %277 = vmatpush3.msra.mxu1 %v120_v11 }
  0x10   :  { %278 = vmatprep.subr.mxu1 %v119_v12 }
  0x11   :  { %279 = vmatpush3.msra.mxu1 %v119_v12 }
  0x12   :  { %280 = vmatprep.subr.mxu1 %v118_v13 }
  0x13   :  { %281 = vmatpush3.msra.mxu1 %v118_v13 }
  0xca   :  { %v265_v15 = vpop.f32.mrf.mxu0 }
  0xcb   :  { %v113_v16 = vadd.f32 %v265_v15, %v233_v14 }
  0xcc   :  { %v107_v17 = vpop.f32.mrf.mxu0 }
  0xcd   :  { %v108_v18 = vadd.f32 %v233_v14, %v107_v17  ;;  %v117_v20 = vmax.f32 %v113_v16, 0.0 }
  0xcf   :  { %v116_v19 = vmax.f32 %v108_v18, 0.0 }
  0xd1   :  { %282 = vmatprep.mubr.msk.f32.mxu1 %vm133_vm1, %v116_v19 }
  0xd2   :  { %283 = vmatmul.mubr.msk.f32.vlgmr.msra.gmra.mxu1 %vm133_vm1, %v117_v20 }
 0x192   :  { %v284_v22 = vpop.f32.mrf.mxu1 }
 0x193   :  { %v212_v23 = vadd.f32 %v284_v22, %v236_v21 }
 0x194   :  { %v206_v24 = vpop.f32.mrf.mxu1 }
 0x195   :  { %216 = vst.msk [vmem:[#allocation2 + $0x8] sm:$0xff] %vm34_vm0, %v212_v23  ;;  %v207_v25 = vadd.f32 %v236_v21, %v206_v24 }
 0x197   :  { %215 = vst.msk [vmem:[#allocation2] sm:$0xff] %vm34_vm0, %v207_v25 }
 0x198   :  { %299 = shalt.err (!%p296_p4)
}
 0x199   :  { %s311_s24 = smov 128   ;;  %s312_s4 = smov 8  }
 0x19a   :  { %228 = dma.vmem_to_hbm [thread:$0]  %s223_s23, 256, %s403_s5, [#allocation3], %s311_s24, %s311_s24, %s312_s4  }
 0x19b   :  { %308 = dma.done.wait [#allocation3], 256  }
 0x19c   :  { %309 = vsyncadd [#allocation3], 4294967040 }
 0x19d   :  { %232 = vsyncpa [#allocation3], 1 }

</bundles_post_ra>
